<compile_context>
chip_gen: v5e
topology: v5e:2x2
jax: 0.10.0
libtpu: 0.0.40
codegen_flags: <defaults>
</compile_context>

<pallas_src>
import functools

import jax
import jax.numpy as jnp
from jax.experimental import pallas as pl
from jax.experimental.pallas import tpu as pltpu

NUM_REL = 3          # num_relations=3 (from the module)
NUM_BASES = 5        # num_bases=5
NUM_CLASSES = 8      # TODO(synk): `num_classes` is an undefined global in the source; assumed 8
HIDDEN = 16          # conv1 output channels
IN_FEAT = 3          # conv1 input channels
LANE_PAD = 128       # lane-dense padding for hidden/class dims


# ----------------------------- hardware sizing -------------------------------

def _vmem_capacity_bytes():
    """Physical VMEM capacity; conservative (v7x-sized) fallback if unknown."""
    try:
        info = pltpu.get_tpu_info()
        for attr in ("vmem_capacity_bytes", "vmem_bytes", "vmem_size_bytes"):
            v = getattr(info, attr, None)
            if v:
                return int(v)
    except Exception:
        pass
    return 64 * 1024 * 1024


def _vmem_limit_bytes():
    """Scoped-VMEM limit for the pallas_calls: large on v5e/v6e (128 MiB
    physical), capped below physical on v7x (64 MiB)."""
    cap = _vmem_capacity_bytes()
    return int(min(cap * 0.9, 120 * 1024 * 1024))


def choose_tm(n, num_rel, fout_pad=LANE_PAD):
    """Row-tile size for the aggregation kernel.

    Budgets the resident bf16 xw_stack (R*N*128*2 B, allow 2 buffers) plus the
    double-buffered per-row streams (A_cat row bf16 + self-term row f32 + out
    row) against the chip's VMEM, then clamps so the row grid has >= 2 steps
    (keeps both v7x TensorCores busy under dimension_semantics=("parallel",)).
    """
    if n < 8:
        return max(1, n)
    cap = _vmem_capacity_bytes()
    budget = int(cap * 0.7)                                   # compiler headroom
    resident = 2 * num_rel * n * fout_pad * 2                 # xw_stack bf16
    per_row = 2 * (num_rel * n * 2 + fout_pad * 4 + fout_pad * 4)
    avail = max(budget - resident, per_row * 8)
    tm = avail // per_row
    tm = int(max(8, min(512, tm, n)))
    if n >= 16:
        tm = min(tm, max(8, (n // 2) // 8 * 8))               # >= 2 grid steps
    return max(8, (tm // 8) * 8)


# --------------------------------- kernels -----------------------------------

def rgcn_project_kernel(x_ref, wcat_ref, root_ref, b_ref, xw_ref, self_ref,
                        *, num_rel, n, fout_pad):
    """Grid-invariant per-layer projection, computed exactly once.

    x_ref    : (N, Fin)    bf16 node features
    wcat_ref : (Fin, R*P)  bf16 per-relation weights, each in a 128-lane slot
    root_ref : (Fin, P)    bf16 root weight (lane-padded)
    b_ref    : (1, P)      f32  bias (lane-padded)
    xw_ref   : (R*N, P)    bf16 out: row r*N + j holds x_j @ W_r
    self_ref : (N, P)      f32  out: x @ W_root + bias
    """
    x = x_ref[...]
    # One fused bf16 matmul for all relations (relation r in lanes [r*P,(r+1)*P)).
    xw_all = jnp.dot(x, wcat_ref[...], preferred_element_type=jnp.float32)   # (N, R*P)
    # Restack relation-major along sublanes: static, lane-aligned 128-wide
    # slices written straight into the output ref (done once per layer, not
    # once per row tile).
    for r in range(num_rel):
        xw_ref[pl.ds(r * n, n), :] = (
            xw_all[:, r * fout_pad:(r + 1) * fout_pad].astype(xw_ref.dtype))
    # Root/self term + bias (f32).
    self_ref[...] = (jnp.dot(x, root_ref[...], preferred_element_type=jnp.float32)
                     + b_ref[...])


def rgcn_aggregate_kernel(a_ref, xw_ref, self_ref, out_ref,
                          *, apply_relu, softmax_valid):
    """Row-tiled aggregation: one bf16 wide-K MXU matmul + element-wise tail.

    a_ref    : (TM, R*N) bf16 fused row-normalized adjacency rows (pipelined)
    xw_ref   : (R*N, P)  bf16 resident per-relation projections
    self_ref : (TM, P)   f32  self/root term rows (pipelined)
    out_ref  : (TM, P)   lane-dense output tile
    """
    agg = jnp.dot(a_ref[...], xw_ref[...], preferred_element_type=jnp.float32)
    o = agg + self_ref[...]

    if apply_relu:
        o = jnp.maximum(o, 0.0)

    if softmax_valid is not None:
        # log_softmax over the first `softmax_valid` lanes; padded lanes masked.
        lane = jax.lax.broadcasted_iota(jnp.int32, o.shape, dimension=1)
        valid = lane < softmax_valid
        o = jnp.where(valid, o, -1e30)
        m = jnp.max(o, axis=1, keepdims=True)
        e = jnp.where(valid, jnp.exp(o - m), 0.0)
        s = jnp.sum(e, axis=1, keepdims=True)
        o = jnp.where(valid, o - m - jnp.log(s), 0.0)

    out_ref[...] = o.astype(out_ref.dtype)


# ------------------------------ pallas_call wrappers --------------------------

def rgcn_project(x, w_cat, root, bias, *, num_rel, fout_pad, vmem_limit):
    """Single-step projection call: returns (xw_stack bf16 (R*N,P), self f32 (N,P))."""
    n, fin = x.shape
    kern = functools.partial(rgcn_project_kernel, num_rel=num_rel, n=n,
                             fout_pad=fout_pad)
    return pl.pallas_call(
        kern,
        grid=(1,),
        out_shape=(jax.ShapeDtypeStruct((num_rel * n, fout_pad), jnp.bfloat16),
                   jax.ShapeDtypeStruct((n, fout_pad), jnp.float32)),
        in_specs=[
            pl.BlockSpec((n, fin), lambda i: (0, 0)),
            pl.BlockSpec(w_cat.shape, lambda i: (0, 0)),
            pl.BlockSpec(root.shape, lambda i: (0, 0)),
            pl.BlockSpec(bias.shape, lambda i: (0, 0)),
        ],
        out_specs=(pl.BlockSpec((num_rel * n, fout_pad), lambda i: (0, 0)),
                   pl.BlockSpec((n, fout_pad), lambda i: (0, 0))),
        compiler_params=pltpu.CompilerParams(
            dimension_semantics=("arbitrary",),
            vmem_limit_bytes=vmem_limit),
    )(x, w_cat, root, bias)


def rgcn_aggregate(a_cat, xw_stack, self_term, *, tm, out_dtype,
                   apply_relu, softmax_valid, vmem_limit):
    """Row-tiled aggregation call: A_cat streamed, xw_stack resident."""
    n = self_term.shape[0]
    rn, p = xw_stack.shape
    grid = (pl.cdiv(n, tm),)
    kern = functools.partial(rgcn_aggregate_kernel, apply_relu=apply_relu,
                             softmax_valid=softmax_valid)
    flops = 2 * n * rn * p
    bytes_accessed = (n * rn * 2) + (rn * p * 2) + (n * p * 4) + \
        (n * p * jnp.dtype(out_dtype).itemsize)
    transcendentals = n * p if softmax_valid is not None else 0
    return pl.pallas_call(
        kern,
        grid=grid,
        out_shape=jax.ShapeDtypeStruct((n, p), out_dtype),
        in_specs=[
            pl.BlockSpec((tm, rn), lambda i: (i, 0)),   # adjacency rows (bf16, pipelined)
            pl.BlockSpec((rn, p), lambda i: (0, 0)),    # resident per-relation projections
            pl.BlockSpec((tm, p), lambda i: (i, 0)),    # self/root term rows
        ],
        out_specs=pl.BlockSpec((tm, p), lambda i: (i, 0)),
        compiler_params=pltpu.CompilerParams(
            dimension_semantics=("parallel",),          # shards rows across v7x's 2 TCs
            vmem_limit_bytes=vmem_limit),
        cost_estimate=pl.CostEstimate(flops=int(flops),
                                      transcendentals=int(transcendentals),
                                      bytes_accessed=int(bytes_accessed)),
    )(a_cat, xw_stack, self_term)


# ---------------------------- wrapper-side plumbing ---------------------------

def _pad_cols(a, width):
    return jnp.pad(a, ((0, 0), (0, width - a.shape[-1])))


def _make_wcat(w, pad):
    """(R, fin, fout) -> (fin, R*pad): relation r occupies lanes [r*pad,(r+1)*pad)."""
    r, fin, fout = w.shape
    wp = jnp.pad(w, ((0, 0), (0, 0), (0, pad - fout)))
    return wp.transpose(1, 0, 2).reshape(fin, r * pad)


def relation_graph_conv_net(x, adj, params, *, tm=None):
    """x: (N, 3) f32 node features; adj: (R, N, N) row-normalized adjacency.
       params: W1 (R,3,16), root1 (3,16), b1 (1,16), W2 (R,16,C), root2 (16,C), b2 (1,C)."""
    n = x.shape[0]
    r = NUM_REL
    p = LANE_PAD
    if tm is None:
        tm = choose_tm(n, r, p)
    vmem_limit = _vmem_limit_bytes()

    # Layout plumbing only (no compute hoisted out of the kernels):
    a_cat = adj.transpose(1, 0, 2).reshape(n, r * n).astype(jnp.bfloat16)   # (N, R*N)
    x_bf = x.astype(jnp.bfloat16)

    w1_cat = _make_wcat(params["W1"], p).astype(jnp.bfloat16)               # (3, R*128)
    root1 = _pad_cols(params["root1"], p).astype(jnp.bfloat16)              # (3, 128)
    b1 = _pad_cols(params["b1"], p)                                          # (1, 128) f32

    w2p = jnp.pad(params["W2"],
                  ((0, 0), (0, p - HIDDEN), (0, p - NUM_CLASSES)))          # (R, 128, 128)
    w2_cat = w2p.transpose(1, 0, 2).reshape(p, r * p).astype(jnp.bfloat16)  # (128, R*128)
    root2 = jnp.pad(params["root2"],
                    ((0, p - HIDDEN), (0, p - NUM_CLASSES))).astype(jnp.bfloat16)
    b2 = _pad_cols(params["b2"], p)                                          # (1, 128) f32

    # Layer 1: RGCN(3 -> 16) + ReLU. Hidden emitted lane-dense bf16 (pad lanes = 0).
    xw1, self1 = rgcn_project(x_bf, w1_cat, root1, b1,
                              num_rel=r, fout_pad=p, vmem_limit=vmem_limit)
    h = rgcn_aggregate(a_cat, xw1, self1, tm=tm, out_dtype=jnp.bfloat16,
                       apply_relu=True, softmax_valid=None, vmem_limit=vmem_limit)

    # F.dropout(x, training=self.training): eval mode -> identity.
    # TODO(synk): training-mode stochastic dropout (p=0.5) not implemented.

    # Layer 2: RGCN(16 -> C) + log_softmax(dim=1) fused in-kernel.
    xw2, self2 = rgcn_project(h, w2_cat, root2, b2,
                              num_rel=r, fout_pad=p, vmem_limit=vmem_limit)
    out_pad = rgcn_aggregate(a_cat, xw2, self2, tm=tm, out_dtype=jnp.float32,
                             apply_relu=False, softmax_valid=NUM_CLASSES,
                             vmem_limit=vmem_limit)
    return out_pad[:, :NUM_CLASSES]


# ------------------------------- test harness ---------------------------------

def make_rgcn_params(key, in_feat, out_feat, num_rel, num_bases):
    """Basis-decomposed RGCNConv parameters (deterministic)."""
    k_basis, k_comp, k_root, k_bias = jax.random.split(key, 4)
    basis = jax.random.normal(k_basis, (num_bases, in_feat, out_feat), jnp.float32) * 0.1
    comp = jax.random.normal(k_comp, (num_rel, num_bases), jnp.float32) * 0.1
    root = jax.random.normal(k_root, (in_feat, out_feat), jnp.float32) * 0.1
    bias = jax.random.normal(k_bias, (out_feat,), jnp.float32) * 0.1
    w = jnp.einsum("rb,bio->rio", comp, basis)                 # (R, in, out)
    return w, root, bias.reshape(1, out_feat)


def build_adjacency(edge_index, edge_type, num_nodes, num_rel):
    """Dense per-relation adjacency with mean aggregation (glue, plain JAX)."""
    src, dst = edge_index[0], edge_index[1]
    a = jnp.zeros((num_rel, num_nodes, num_nodes), jnp.float32)
    a = a.at[edge_type, dst, src].add(1.0)
    deg = a.sum(axis=-1, keepdims=True)
    return jnp.where(deg > 0, a / jnp.maximum(deg, 1.0), 0.0)


def ref_forward(x, adj, params):
    """Pure-JAX f32 reference for validation."""
    h = x @ params["root1"] + params["b1"]
    for r in range(NUM_REL):
        h = h + adj[r] @ (x @ params["W1"][r])
    h = jnp.maximum(h, 0.0)
    o = h @ params["root2"] + params["b2"]
    for r in range(NUM_REL):
        o = o + adj[r] @ (h @ params["W2"][r])
    return jax.nn.log_softmax(o, axis=1)


if __name__ == "__main__":
    key = jax.random.PRNGKey(0)
    k_x, k_ei, k_et, k_p1, k_p2 = jax.random.split(key, 5)

    num_points = 256         # N nodes
    num_edges = 1024

    # synthetic graph (stands in for `data.x`, `edge_index`; the third RGCNConv
    # positional arg is the integer relation type per edge)
    x = jax.random.normal(k_x, (num_points, IN_FEAT), jnp.float32)
    edge_index = jax.random.randint(k_ei, (2, num_edges), 0, num_points, jnp.int32)
    edge_type = jax.random.randint(k_et, (num_edges,), 0, NUM_REL, jnp.int32)
    adj = build_adjacency(edge_index, edge_type, num_points, NUM_REL)

    w1, root1, b1 = make_rgcn_params(k_p1, IN_FEAT, HIDDEN, NUM_REL, NUM_BASES)
    w2, root2, b2 = make_rgcn_params(k_p2, HIDDEN, NUM_CLASSES, NUM_REL, NUM_BASES)
    params = dict(W1=w1, root1=root1, b1=b1, W2=w2, root2=root2, b2=b2)

    # tm heuristic picks 128 here -> 2-step row grid (exercises pipelined tiling
    # and the v7x two-TensorCore split).
    out = relation_graph_conv_net(x, adj, params)
    out = jax.block_until_ready(out)

    ref = ref_forward(x, adj, params)
    assert out.shape == (num_points, NUM_CLASSES)
    # bf16 features / weights / adjacency / hidden -> bf16-level tolerance vs f32 ref.
    assert jnp.allclose(out, ref, atol=2e-2, rtol=2e-2), "mismatch vs JAX reference"

    print("KERNEL_OK")
</pallas_src>

<mosaic_0001>
module attributes {stable_mosaic.version = 11 : i64} {
  func.func @rgcn_project_kernel(%arg0: i32, %arg1: memref<256x3xbf16, #tpu.memory_space<vmem>>, %arg2: memref<3x384xbf16, #tpu.memory_space<vmem>>, %arg3: memref<3x128xbf16, #tpu.memory_space<vmem>>, %arg4: memref<1x128xf32, #tpu.memory_space<vmem>>, %arg5: memref<768x128xbf16, #tpu.memory_space<vmem>>, %arg6: memref<256x128xf32, #tpu.memory_space<vmem>>) attributes {dimension_semantics = [#tpu.dimension_semantics<arbitrary>], iteration_bounds = array<i64: 1>, scalar_prefetch = 0 : i64, scratch_operands = 0 : i64, tpu.core_type = #tpu.core_type<tc>, window_params = [{pipeline_mode = #tpu.pipeline_mode<synchronous>, transform_indices = @transform_0, window_bounds = array<i64: 256, 3>}, {pipeline_mode = #tpu.pipeline_mode<synchronous>, transform_indices = @transform_1, window_bounds = array<i64: 3, 384>}, {pipeline_mode = #tpu.pipeline_mode<synchronous>, transform_indices = @transform_2, window_bounds = array<i64: 3, 128>}, {pipeline_mode = #tpu.pipeline_mode<synchronous>, transform_indices = @transform_3, window_bounds = array<i64: 1, 128>}, {pipeline_mode = #tpu.pipeline_mode<synchronous>, transform_indices = @transform_4, window_bounds = array<i64: 768, 128>}, {pipeline_mode = #tpu.pipeline_mode<synchronous>, transform_indices = @transform_5, window_bounds = array<i64: 256, 128>}]} {
    %c0 = arith.constant 0 : index
    %c0_0 = arith.constant 0 : index
    %0 = vector.load %arg1[%c0, %c0_0] : memref<256x3xbf16, #tpu.memory_space<vmem>>, vector<256x3xbf16>
    %c0_1 = arith.constant 0 : index
    %c0_2 = arith.constant 0 : index
    %1 = vector.load %arg2[%c0_1, %c0_2] : memref<3x384xbf16, #tpu.memory_space<vmem>>, vector<3x384xbf16>
    %cst = arith.constant dense<0.000000e+00> : vector<256x384xf32>
    %2 = tpu.matmul %0, %1, %cst {dimension_numbers = #tpu.dot_dimension_numbers<[1], [0], [0], [1], [0, 0, 1, 1], [], []>} : vector<256x3xbf16>, vector<3x384xbf16>, vector<256x384xf32> -> vector<256x384xf32>
    %3 = vector.extract_strided_slice %2 {offsets = [0, 0], sizes = [256, 128], strides = [1, 1]} : vector<256x384xf32> to vector<256x128xf32>
    %4 = arith.truncf %3 : vector<256x128xf32> to vector<256x128xbf16>
    %c0_3 = arith.constant 0 : index
    %c0_4 = arith.constant 0 : index
    %5 = vector.load %arg5[%c0_3, %c0_4] : memref<768x128xbf16, #tpu.memory_space<vmem>>, vector<256x128xbf16>
    tpu.vector_store %arg5[%c0_3, %c0_4], %4 {strides = array<i32>} : memref<768x128xbf16, #tpu.memory_space<vmem>>, vector<256x128xbf16>,
    %6 = vector.extract_strided_slice %2 {offsets = [0, 128], sizes = [256, 128], strides = [1, 1]} : vector<256x384xf32> to vector<256x128xf32>
    %7 = arith.truncf %6 : vector<256x128xf32> to vector<256x128xbf16>
    %c256 = arith.constant 256 : index
    %c0_5 = arith.constant 0 : index
    %8 = vector.load %arg5[%c256, %c0_5] : memref<768x128xbf16, #tpu.memory_space<vmem>>, vector<256x128xbf16>
    tpu.vector_store %arg5[%c256, %c0_5], %7 {strides = array<i32>} : memref<768x128xbf16, #tpu.memory_space<vmem>>, vector<256x128xbf16>,
    %9 = vector.extract_strided_slice %2 {offsets = [0, 256], sizes = [256, 128], strides = [1, 1]} : vector<256x384xf32> to vector<256x128xf32>
    %10 = arith.truncf %9 : vector<256x128xf32> to vector<256x128xbf16>
    %c512 = arith.constant 512 : index
    %c0_6 = arith.constant 0 : index
    %11 = vector.load %arg5[%c512, %c0_6] : memref<768x128xbf16, #tpu.memory_space<vmem>>, vector<256x128xbf16>
    tpu.vector_store %arg5[%c512, %c0_6], %10 {strides = array<i32>} : memref<768x128xbf16, #tpu.memory_space<vmem>>, vector<256x128xbf16>,
    %c0_7 = arith.constant 0 : index
    %c0_8 = arith.constant 0 : index
    %12 = vector.load %arg3[%c0_7, %c0_8] : memref<3x128xbf16, #tpu.memory_space<vmem>>, vector<3x128xbf16>
    %cst_9 = arith.constant dense<0.000000e+00> : vector<256x128xf32>
    %13 = tpu.matmul %0, %12, %cst_9 {dimension_numbers = #tpu.dot_dimension_numbers<[1], [0], [0], [1], [0, 0, 1, 1], [], []>} : vector<256x3xbf16>, vector<3x128xbf16>, vector<256x128xf32> -> vector<256x128xf32>
    %c0_10 = arith.constant 0 : index
    %c0_11 = arith.constant 0 : index
    %14 = vector.load %arg4[%c0_10, %c0_11] : memref<1x128xf32, #tpu.memory_space<vmem>>, vector<1x128xf32>
    %15 = vector.broadcast %14 : vector<1x128xf32> to vector<256x128xf32>
    %16 = arith.addf %13, %15 : vector<256x128xf32>
    %c0_12 = arith.constant 0 : index
    %c0_13 = arith.constant 0 : index
    %17 = vector.load %arg6[%c0_12, %c0_13] : memref<256x128xf32, #tpu.memory_space<vmem>>, vector<256x128xf32>
    tpu.vector_store %arg6[%c0_12, %c0_13], %16 {strides = array<i32>} : memref<256x128xf32, #tpu.memory_space<vmem>>, vector<256x128xf32>,
    return
  }
  func.func @transform_0(%arg0: i32) -> (i32, i32) {
    %c0_i32 = arith.constant 0 : i32
    %c0_i32_0 = arith.constant 0 : i32
    %c0_i32_1 = arith.constant 0 : i32
    return %c0_i32, %c0_i32_0 : i32, i32
  }
  func.func @transform_1(%arg0: i32) -> (i32, i32) {
    %c0_i32 = arith.constant 0 : i32
    %c0_i32_0 = arith.constant 0 : i32
    %c0_i32_1 = arith.constant 0 : i32
    return %c0_i32, %c0_i32_0 : i32, i32
  }
  func.func @transform_2(%arg0: i32) -> (i32, i32) {
    %c0_i32 = arith.constant 0 : i32
    %c0_i32_0 = arith.constant 0 : i32
    %c0_i32_1 = arith.constant 0 : i32
    return %c0_i32, %c0_i32_0 : i32, i32
  }
  func.func @transform_3(%arg0: i32) -> (i32, i32) {
    %c0_i32 = arith.constant 0 : i32
    %c0_i32_0 = arith.constant 0 : i32
    %c0_i32_1 = arith.constant 0 : i32
    return %c0_i32, %c0_i32_0 : i32, i32
  }
  func.func @transform_4(%arg0: i32) -> (i32, i32) {
    %c0_i32 = arith.constant 0 : i32
    %c0_i32_0 = arith.constant 0 : i32
    %c0_i32_1 = arith.constant 0 : i32
    return %c0_i32, %c0_i32_0 : i32, i32
  }
  func.func @transform_5(%arg0: i32) -> (i32, i32) {
    %c0_i32 = arith.constant 0 : i32
    %c0_i32_0 = arith.constant 0 : i32
    %c0_i32_1 = arith.constant 0 : i32
    return %c0_i32, %c0_i32_0 : i32, i32
  }
}

</mosaic_0001>

<bundles_post_ra>
// kernel: tpu_custom_call.1
= control target key start
LH: loop header
LB: loop body
LE: loop exit
PB: predicated region body
PF: predicated region fallthrough
CT: control target
= control target key end

     0   :  { %11 = vsyncpa [#allocation3], 0  ;;  %vm189_vm0 = vcmask 1040384   ;;  %vm190_vm1 = vcmask 1041408   ;;  %v1314_v1 = vmov 65535   ;;  %s1512_s0 = inlined_call_operand.vmem [shape: bf16[256,3], index: 0, kind: input, shape index: {}]   ;;  %s1513_s1 = inlined_call_operand.vmem [shape: bf16[3,384], index: 1, kind: input, shape index: {}]   ;;  %s1514_s2 = inlined_call_operand.vmem [shape: bf16[3,128], index: 2, kind: input, shape index: {}]   ;;  %s1515_s3 = inlined_call_operand.vmem [shape: f32[1,128], index: 3, kind: input, shape index: {}]   ;;  %s1516_s4 = inlined_call_operand.hbm [shape: bf16[768,128], index: 4, kind: output, shape index: {0}]   ;;  %s1517_s5 = inlined_call_operand.hbm [shape: f32[256,128], index: 5, kind: output, shape index: {1}]  }
   0x1   :  { %v658_v0 = vld [vmem:[%s1514_s2] sm:$0x3]  ;;  %v191_v2 = vsel %vm189_vm0, 4294967295, %v1314_v1 }
   0x2   :  { %v54_v3 = vld [vmem:[%s1513_s1] sm:$0x3f]  ;;  %v192_v4 = vsel %vm190_vm1, %v191_v2, 0 }
   0x3   :  { %136 = vst [vmem:[#allocation1] ss:$4 sm:$0xff] %v54_v3  ;;  %v664_v5 = vand.u32 %v658_v0, %v192_v4 }
   0x4   :  { %12 = vsyncpa [#allocation5], 0  ;;  %v951_v6 = vld [vmem:[%s1512_s0] sm:$0xff]  ;;  %vm140_vm2 = vcmask 23552   ;;  %v952_v13 = vld [vmem:[%s1512_s0 + $0x8] sm:$0xff]  ;;  %s806_s29 = sshll.u32 %s1517_s5, 4  ;;  %s807_s29 = int_to_ptr.hbm [resolvable:$true] %s806_s29 }
   0x5   :  { %673 = vmatpush.bf16.msra.mxu3 %v664_v5  ;;  %v953_v14 = vld [vmem:[%s1512_s0 + $0x10] sm:$0xff]  ;;  %v954_v15 = vld [vmem:[%s1512_s0 + $0x18] sm:$0xff]  ;;  %v955_v16 = vld [vmem:[%s1512_s0 + $0x20] sm:$0xff]  ;;  %s1316_s30 = smov 128   ;;  %s1317_s6 = smov 8  }
   0x6   :  { %v956_v17 = vld [vmem:[%s1512_s0 + $0x28] sm:$0xff]  ;;  %v957_v18 = vld [vmem:[%s1512_s0 + $0x30] sm:$0xff]  ;;  %v958_v19 = vld [vmem:[%s1512_s0 + $0x38] sm:$0xff]  ;;  %s1318_s7 = smov [#allocation2]   ;;  %s793_s10 = sshll.u32 %s1516_s4, 4  ;;  %s794_s10 = int_to_ptr.hbm [resolvable:$true] %s793_s10 }
   0x7   :  { %v959_v20 = vld [vmem:[%s1512_s0 + $0x40] sm:$0xff]  ;;  %v960_v31 = vld [vmem:[%s1512_s0 + $0x48] sm:$0xff]  ;;  %v961_v45 = vld [vmem:[%s1512_s0 + $0x50] sm:$0xff]  ;;  %s791_s8 = sshll.u32 %s1318_s7, 4  ;;  %s1319_s11 = smov 64   ;;  %s792_s8 = int_to_ptr.vmem [resolvable:$true] %s791_s8 }
   0x8   :  { %935 = vmatmul.msk.bf16.vlgmr.msra.gmra.mxu3 %vm140_vm2, %v951_v6  ;;  %v1420_v21 = vld [vmem:[%s1515_s3] ss:$0 sm:$0xff]  ;;  %v962_v59 = vld [vmem:[%s1512_s0 + $0x58] sm:$0xff]  ;;  %s1320_s12 = smov 4  }
   0xa   :  { %v137_v7 = vld.sshfl [vmem:[#allocation1] sm:$0xff pattern:$0x73625140]  ;;  %v138_v8 = vld.sshfl [vmem:[#allocation1 + $0x8] sm:$0xff pattern:$0x73625140] }
   0xb   :  { %v193_v9 = vand.u32 %v192_v4, %v137_v7  ;;  %v195_v10 = vand.u32 %v192_v4, %v138_v8  ;;  %v139_v11 = vld.sshfl [vmem:[#allocation1 + $0x10] sm:$0xff pattern:$0x73625140] }
   0xc   :  { %v197_v12 = vand.u32 %v192_v4, %v139_v11 }
   0xd   :  { %206 = vmatpush.bf16.msra.mxu0 %v193_v9  ;;  %295 = vmatpush.bf16.msra.mxu1 %v195_v10  ;;  %v963_v9 = vld [vmem:[%s1512_s0 + $0x60] sm:$0xff] }
   0xe   :  { %384 = vmatpush.bf16.msra.mxu2 %v197_v12 }
  0x10   :  { %887 = vmatmul.msk.bf16.vlgmr.msra.gmra.mxu0 %vm140_vm2, %v951_v6  ;;  %903 = vmatmul.msk.bf16.vlgmr.msra.gmra.mxu1 %vm140_vm2, %v951_v6 }
  0x11   :  { %919 = vmatmul.msk.bf16.vlgmr.msra.gmra.mxu2 %vm140_vm2, %v951_v6 }
  0x18   :  { %936 = vmatmul.msk.bf16.gmra.mxu3 %vm140_vm2, %v952_v13 }
  0x20   :  { %888 = vmatmul.msk.bf16.gmra.mxu0 %vm140_vm2, %v952_v13  ;;  %904 = vmatmul.msk.bf16.gmra.mxu1 %vm140_vm2, %v952_v13 }
  0x21   :  { %920 = vmatmul.msk.bf16.gmra.mxu2 %vm140_vm2, %v952_v13 }
  0x28   :  { %937 = vmatmul.msk.bf16.gmra.mxu3 %vm140_vm2, %v953_v14 }
  0x30   :  { %889 = vmatmul.msk.bf16.gmra.mxu0 %vm140_vm2, %v953_v14  ;;  %905 = vmatmul.msk.bf16.gmra.mxu1 %vm140_vm2, %v953_v14 }
  0x31   :  { %921 = vmatmul.msk.bf16.gmra.mxu2 %vm140_vm2, %v953_v14 }
  0x38   :  { %938 = vmatmul.msk.bf16.gmra.mxu3 %vm140_vm2, %v954_v15 }
  0x40   :  { %890 = vmatmul.msk.bf16.gmra.mxu0 %vm140_vm2, %v954_v15  ;;  %906 = vmatmul.msk.bf16.gmra.mxu1 %vm140_vm2, %v954_v15 }
  0x41   :  { %922 = vmatmul.msk.bf16.gmra.mxu2 %vm140_vm2, %v954_v15 }
  0x48   :  { %939 = vmatmul.msk.bf16.gmra.mxu3 %vm140_vm2, %v955_v16 }
  0x50   :  { %891 = vmatmul.msk.bf16.gmra.mxu0 %vm140_vm2, %v955_v16  ;;  %907 = vmatmul.msk.bf16.gmra.mxu1 %vm140_vm2, %v955_v16 }
  0x51   :  { %923 = vmatmul.msk.bf16.gmra.mxu2 %vm140_vm2, %v955_v16 }
  0x58   :  { %940 = vmatmul.msk.bf16.gmra.mxu3 %vm140_vm2, %v956_v17 }
  0x60   :  { %892 = vmatmul.msk.bf16.gmra.mxu0 %vm140_vm2, %v956_v17  ;;  %908 = vmatmul.msk.bf16.gmra.mxu1 %vm140_vm2, %v956_v17 }
  0x61   :  { %924 = vmatmul.msk.bf16.gmra.mxu2 %vm140_vm2, %v956_v17 }
  0x68   :  { %941 = vmatmul.msk.bf16.gmra.mxu3 %vm140_vm2, %v957_v18 }
  0x70   :  { %893 = vmatmul.msk.bf16.gmra.mxu0 %vm140_vm2, %v957_v18  ;;  %909 = vmatmul.msk.bf16.gmra.mxu1 %vm140_vm2, %v957_v18 }
  0x71   :  { %925 = vmatmul.msk.bf16.gmra.mxu2 %vm140_vm2, %v957_v18 }
  0x78   :  { %942 = vmatmul.msk.bf16.gmra.mxu3 %vm140_vm2, %v958_v19 }
  0x80   :  { %894 = vmatmul.msk.bf16.gmra.mxu0 %vm140_vm2, %v958_v19  ;;  %910 = vmatmul.msk.bf16.gmra.mxu1 %vm140_vm2, %v958_v19 }
  0x81   :  { %926 = vmatmul.msk.bf16.gmra.mxu2 %vm140_vm2, %v958_v19 }
  0x88   :  { %943 = vmatmul.msk.bf16.gmra.mxu3 %vm140_vm2, %v959_v20 }
  0x8b   :  { %v675_v22 = vpop.f32.mrf.mxu3 }
  0x8c   :  { %v676_v25 = vadd.f32 %v1420_v21, %v675_v22 }
  0x8d   :  { %v208_v23 = vpop.f32.mrf.mxu0  ;;  %v297_v24 = vpop.f32.mrf.mxu1 }
  0x8e   :  { %755 = vst [vmem:[#allocation4] sm:$0xff] %v676_v25 }
  0x90   :  { %895 = vmatmul.msk.bf16.gmra.mxu0 %vm140_vm2, %v959_v20  ;;  %911 = vmatmul.msk.bf16.gmra.mxu1 %vm140_vm2, %v959_v20 }
  0x91   :  { %927 = vmatmul.msk.bf16.gmra.mxu2 %vm140_vm2, %v959_v20 }
  0x93   :  { %v677_v27 = vpop.f32.mrf.mxu3 }
  0x94   :  { %v386_v26 = vpop.f32.mrf.mxu2  ;;  %v678_v30 = vadd.f32 %v1420_v21, %v677_v27 }
  0x95   :  { %v210_v28 = vpop.f32.mrf.mxu0  ;;  %v299_v29 = vpop.f32.mrf.mxu1 }
  0x96   :  { %v970_v32 = vpack.c.bf16 %v210_v28, %v208_v23  ;;  %v1050_v33 = vpack.c.bf16 %v299_v29, %v297_v24  ;;  %756 = vst [vmem:[#allocation4 + $0x8] sm:$0xff] %v678_v30  ;;  %v964_v24 = vld [vmem:[%s1512_s0 + $0x68] sm:$0xff] }
  0x98   :  { %971 = vst [vmem:[#allocation2] sm:$0xff] %v970_v32   ;;  %944 = vmatmul.msk.bf16.gmra.mxu3 %vm140_vm2, %v960_v31 }
  0x99   :  { %1222 = vst [vmem:[#allocation2 + $0x80] sm:$0xff] %v1050_v33  }
  0x9b   :  { %v680_v35 = vpop.f32.mrf.mxu3 }
  0x9c   :  { %v388_v34 = vpop.f32.mrf.mxu2  ;;  %v681_v39 = vadd.f32 %v1420_v21, %v680_v35 }
  0x9d   :  { %v1130_v36 = vpack.c.bf16 %v388_v34, %v386_v26  ;;  %v213_v37 = vpop.f32.mrf.mxu0  ;;  %v302_v38 = vpop.f32.mrf.mxu1 }
  0x9e   :  { %757 = vst [vmem:[#allocation4 + $0x10] sm:$0xff] %v681_v39 }
  0x9f   :  { %1238 = vst [vmem:[#allocation2 + $0x100] sm:$0xff] %v1130_v36  }
  0xa0   :  { %896 = vmatmul.msk.bf16.gmra.mxu0 %vm140_vm2, %v960_v31  ;;  %912 = vmatmul.msk.bf16.gmra.mxu1 %vm140_vm2, %v960_v31 }
  0xa1   :  { %928 = vmatmul.msk.bf16.gmra.mxu2 %vm140_vm2, %v960_v31 }
  0xa3   :  { %v682_v41 = vpop.f32.mrf.mxu3 }
  0xa4   :  { %v391_v40 = vpop.f32.mrf.mxu2  ;;  %v683_v44 = vadd.f32 %v1420_v21, %v682_v41 }
  0xa5   :  { %v215_v42 = vpop.f32.mrf.mxu0  ;;  %v304_v43 = vpop.f32.mrf.mxu1 }
  0xa6   :  { %v975_v46 = vpack.c.bf16 %v215_v42, %v213_v37  ;;  %v1055_v47 = vpack.c.bf16 %v304_v43, %v302_v38  ;;  %758 = vst [vmem:[#allocation4 + $0x18] sm:$0xff] %v683_v44  ;;  %v965_v38 = vld [vmem:[%s1512_s0 + $0x70] sm:$0xff] }
  0xa8   :  { %1207 = vst [vmem:[#allocation2 + $0x8] sm:$0xff] %v975_v46   ;;  %945 = vmatmul.msk.bf16.gmra.mxu3 %vm140_vm2, %v961_v45 }
  0xa9   :  { %1223 = vst [vmem:[#allocation2 + $0x88] sm:$0xff] %v1055_v47  }
  0xab   :  { %v685_v49 = vpop.f32.mrf.mxu3 }
  0xac   :  { %v393_v48 = vpop.f32.mrf.mxu2  ;;  %v686_v53 = vadd.f32 %v1420_v21, %v685_v49 }
  0xad   :  { %v1135_v50 = vpack.c.bf16 %v393_v48, %v391_v40  ;;  %v218_v51 = vpop.f32.mrf.mxu0  ;;  %v307_v52 = vpop.f32.mrf.mxu1 }
  0xae   :  { %759 = vst [vmem:[#allocation4 + $0x20] sm:$0xff] %v686_v53 }
  0xaf   :  { %1239 = vst [vmem:[#allocation2 + $0x108] sm:$0xff] %v1135_v50  }
  0xb0   :  { %897 = vmatmul.msk.bf16.gmra.mxu0 %vm140_vm2, %v961_v45  ;;  %913 = vmatmul.msk.bf16.gmra.mxu1 %vm140_vm2, %v961_v45 }
  0xb1   :  { %929 = vmatmul.msk.bf16.gmra.mxu2 %vm140_vm2, %v961_v45 }
  0xb3   :  { %v687_v55 = vpop.f32.mrf.mxu3 }
  0xb4   :  { %v396_v54 = vpop.f32.mrf.mxu2  ;;  %v688_v58 = vadd.f32 %v1420_v21, %v687_v55 }
  0xb5   :  { %v220_v56 = vpop.f32.mrf.mxu0  ;;  %v309_v57 = vpop.f32.mrf.mxu1 }
  0xb6   :  { %v980_v60 = vpack.c.bf16 %v220_v56, %v218_v51  ;;  %v1060_v61 = vpack.c.bf16 %v309_v57, %v307_v52  ;;  %760 = vst [vmem:[#allocation4 + $0x28] sm:$0xff] %v688_v58  ;;  %v966_v52 = vld [vmem:[%s1512_s0 + $0x78] sm:$0xff]  ;;  %s1315_s0 = smov [#allocation4]  }
  0xb7   :  { %s804_s26 = sshll.u32 %s1315_s0, 4  ;;  %s805_s26 = int_to_ptr.vmem [resolvable:$true] %s804_s26 }
  0xb8   :  { %1208 = vst [vmem:[#allocation2 + $0x10] sm:$0xff] %v980_v60   ;;  %946 = vmatmul.msk.bf16.gmra.mxu3 %vm140_vm2, %v962_v59 }
  0xb9   :  { %1224 = vst [vmem:[#allocation2 + $0x90] sm:$0xff] %v1060_v61  }
  0xbb   :  { %v690_v63 = vpop.f32.mrf.mxu3 }
  0xbc   :  { %v398_v62 = vpop.f32.mrf.mxu2  ;;  %v691_v3 = vadd.f32 %v1420_v21, %v690_v63 }
  0xbd   :  { %v1140_v0 = vpack.c.bf16 %v398_v62, %v396_v54  ;;  %v223_v1 = vpop.f32.mrf.mxu0  ;;  %v312_v2 = vpop.f32.mrf.mxu1 }
  0xbe   :  { %761 = vst [vmem:[#allocation4 + $0x30] sm:$0xff] %v691_v3 }
  0xbf   :  { %1240 = vst [vmem:[#allocation2 + $0x110] sm:$0xff] %v1140_v0  }
  0xc0   :  { %898 = vmatmul.msk.bf16.gmra.mxu0 %vm140_vm2, %v962_v59  ;;  %914 = vmatmul.msk.bf16.gmra.mxu1 %vm140_vm2, %v962_v59 }
  0xc1   :  { %930 = vmatmul.msk.bf16.gmra.mxu2 %vm140_vm2, %v962_v59 }
  0xc3   :  { %v692_v5 = vpop.f32.mrf.mxu3 }
  0xc4   :  { %v401_v4 = vpop.f32.mrf.mxu2  ;;  %v693_v8 = vadd.f32 %v1420_v21, %v692_v5 }
  0xc5   :  { %v225_v6 = vpop.f32.mrf.mxu0  ;;  %v314_v7 = vpop.f32.mrf.mxu1 }
  0xc6   :  { %v985_v10 = vpack.c.bf16 %v225_v6, %v223_v1  ;;  %v1065_v11 = vpack.c.bf16 %v314_v7, %v312_v2  ;;  %762 = vst [vmem:[#allocation4 + $0x38] sm:$0xff] %v693_v8 }
  0xc8   :  { %1209 = vst [vmem:[#allocation2 + $0x18] sm:$0xff] %v985_v10   ;;  %947 = vmatmul.msk.bf16.gmra.mxu3 %vm140_vm2, %v963_v9 }
  0xc9   :  { %1225 = vst [vmem:[#allocation2 + $0x98] sm:$0xff] %v1065_v11  }
  0xcb   :  { %v695_v13 = vpop.f32.mrf.mxu3 }
  0xcc   :  { %v403_v12 = vpop.f32.mrf.mxu2  ;;  %v696_v17 = vadd.f32 %v1420_v21, %v695_v13 }
  0xcd   :  { %v1145_v14 = vpack.c.bf16 %v403_v12, %v401_v4  ;;  %v228_v15 = vpop.f32.mrf.mxu0  ;;  %v317_v16 = vpop.f32.mrf.mxu1 }
  0xce   :  { %763 = vst [vmem:[#allocation4 + $0x40] sm:$0xff] %v696_v17 }
  0xcf   :  { %1241 = vst [vmem:[#allocation2 + $0x118] sm:$0xff] %v1145_v14  }
  0xd0   :  { %899 = vmatmul.msk.bf16.gmra.mxu0 %vm140_vm2, %v963_v9  ;;  %915 = vmatmul.msk.bf16.gmra.mxu1 %vm140_vm2, %v963_v9 }
  0xd1   :  { %931 = vmatmul.msk.bf16.gmra.mxu2 %vm140_vm2, %v963_v9 }
  0xd3   :  { %v697_v19 = vpop.f32.mrf.mxu3 }
  0xd4   :  { %v406_v18 = vpop.f32.mrf.mxu2  ;;  %v698_v23 = vadd.f32 %v1420_v21, %v697_v19 }
  0xd5   :  { %v230_v20 = vpop.f32.mrf.mxu0  ;;  %v319_v22 = vpop.f32.mrf.mxu1 }
  0xd6   :  { %v990_v25 = vpack.c.bf16 %v230_v20, %v228_v15  ;;  %v1070_v26 = vpack.c.bf16 %v319_v22, %v317_v16  ;;  %764 = vst [vmem:[#allocation4 + $0x48] sm:$0xff] %v698_v23 }
  0xd8   :  { %1210 = vst [vmem:[#allocation2 + $0x20] sm:$0xff] %v990_v25   ;;  %948 = vmatmul.msk.bf16.gmra.mxu3 %vm140_vm2, %v964_v24 }
  0xd9   :  { %1226 = vst [vmem:[#allocation2 + $0xa0] sm:$0xff] %v1070_v26  }
  0xdb   :  { %v700_v28 = vpop.f32.mrf.mxu3 }
  0xdc   :  { %v408_v27 = vpop.f32.mrf.mxu2  ;;  %v701_v32 = vadd.f32 %v1420_v21, %v700_v28 }
  0xdd   :  { %v1150_v29 = vpack.c.bf16 %v408_v27, %v406_v18  ;;  %v233_v30 = vpop.f32.mrf.mxu0  ;;  %v322_v31 = vpop.f32.mrf.mxu1 }
  0xde   :  { %765 = vst [vmem:[#allocation4 + $0x50] sm:$0xff] %v701_v32 }
  0xdf   :  { %1242 = vst [vmem:[#allocation2 + $0x120] sm:$0xff] %v1150_v29  }
  0xe0   :  { %900 = vmatmul.msk.bf16.gmra.mxu0 %vm140_vm2, %v964_v24  ;;  %916 = vmatmul.msk.bf16.gmra.mxu1 %vm140_vm2, %v964_v24 }
  0xe1   :  { %932 = vmatmul.msk.bf16.gmra.mxu2 %vm140_vm2, %v964_v24 }
  0xe3   :  { %v702_v34 = vpop.f32.mrf.mxu3 }
  0xe4   :  { %v411_v33 = vpop.f32.mrf.mxu2  ;;  %v703_v37 = vadd.f32 %v1420_v21, %v702_v34 }
  0xe5   :  { %v235_v35 = vpop.f32.mrf.mxu0  ;;  %v324_v36 = vpop.f32.mrf.mxu1 }
  0xe6   :  { %v995_v39 = vpack.c.bf16 %v235_v35, %v233_v30  ;;  %v1075_v40 = vpack.c.bf16 %v324_v36, %v322_v31  ;;  %766 = vst [vmem:[#allocation4 + $0x58] sm:$0xff] %v703_v37 }
  0xe8   :  { %1211 = vst [vmem:[#allocation2 + $0x28] sm:$0xff] %v995_v39   ;;  %949 = vmatmul.msk.bf16.gmra.mxu3 %vm140_vm2, %v965_v38 }
  0xe9   :  { %1227 = vst [vmem:[#allocation2 + $0xa8] sm:$0xff] %v1075_v40  }
  0xeb   :  { %v705_v42 = vpop.f32.mrf.mxu3 }
  0xec   :  { %v413_v41 = vpop.f32.mrf.mxu2  ;;  %v706_v46 = vadd.f32 %v1420_v21, %v705_v42 }
  0xed   :  { %v1155_v43 = vpack.c.bf16 %v413_v41, %v411_v33  ;;  %v238_v44 = vpop.f32.mrf.mxu0  ;;  %v327_v45 = vpop.f32.mrf.mxu1 }
  0xee   :  { %767 = vst [vmem:[#allocation4 + $0x60] sm:$0xff] %v706_v46 }
  0xef   :  { %1243 = vst [vmem:[#allocation2 + $0x128] sm:$0xff] %v1155_v43  }
  0xf0   :  { %901 = vmatmul.msk.bf16.gmra.mxu0 %vm140_vm2, %v965_v38  ;;  %917 = vmatmul.msk.bf16.gmra.mxu1 %vm140_vm2, %v965_v38 }
  0xf1   :  { %933 = vmatmul.msk.bf16.gmra.mxu2 %vm140_vm2, %v965_v38 }
  0xf3   :  { %v707_v48 = vpop.f32.mrf.mxu3 }
  0xf4   :  { %v416_v47 = vpop.f32.mrf.mxu2  ;;  %v708_v51 = vadd.f32 %v1420_v21, %v707_v48 }
  0xf5   :  { %v240_v49 = vpop.f32.mrf.mxu0  ;;  %v329_v50 = vpop.f32.mrf.mxu1 }
  0xf6   :  { %v1000_v53 = vpack.c.bf16 %v240_v49, %v238_v44  ;;  %v1080_v54 = vpack.c.bf16 %v329_v50, %v327_v45  ;;  %768 = vst [vmem:[#allocation4 + $0x68] sm:$0xff] %v708_v51 }
  0xf8   :  { %1212 = vst [vmem:[#allocation2 + $0x30] sm:$0xff] %v1000_v53   ;;  %950 = vmatmul.msk.bf16.gmra.mxu3 %vm140_vm2, %v966_v52 }
  0xf9   :  { %1228 = vst [vmem:[#allocation2 + $0xb0] sm:$0xff] %v1080_v54  }
  0xfb   :  { %v710_v56 = vpop.f32.mrf.mxu3 }
  0xfc   :  { %v418_v55 = vpop.f32.mrf.mxu2  ;;  %v711_v60 = vadd.f32 %v1420_v21, %v710_v56 }
  0xfd   :  { %v1160_v57 = vpack.c.bf16 %v418_v55, %v416_v47  ;;  %v243_v58 = vpop.f32.mrf.mxu0  ;;  %v332_v59 = vpop.f32.mrf.mxu1 }
  0xfe   :  { %769 = vst [vmem:[#allocation4 + $0x70] sm:$0xff] %v711_v60 }
  0xff   :  { %1244 = vst [vmem:[#allocation2 + $0x130] sm:$0xff] %v1160_v57  }
 0x100   :  { %902 = vmatmul.msk.bf16.gmra.mxu0 %vm140_vm2, %v966_v52  ;;  %918 = vmatmul.msk.bf16.gmra.mxu1 %vm140_vm2, %v966_v52 }
 0x101   :  { %934 = vmatmul.msk.bf16.gmra.mxu2 %vm140_vm2, %v966_v52 }
 0x103   :  { %v712_v62 = vpop.f32.mrf.mxu3 }
 0x104   :  { %v421_v61 = vpop.f32.mrf.mxu2  ;;  %v713_v1 = vadd.f32 %v1420_v21, %v712_v62 }
 0x105   :  { %v245_v63 = vpop.f32.mrf.mxu0  ;;  %v334_v0 = vpop.f32.mrf.mxu1 }
 0x106   :  { %v1005_v2 = vpack.c.bf16 %v245_v63, %v243_v58  ;;  %v1085_v3 = vpack.c.bf16 %v334_v0, %v332_v59  ;;  %770 = vst [vmem:[#allocation4 + $0x78] sm:$0xff] %v713_v1 }
 0x108   :  { %1213 = vst [vmem:[#allocation2 + $0x38] sm:$0xff] %v1005_v2  }
 0x109   :  { %1229 = vst [vmem:[#allocation2 + $0xb8] sm:$0xff] %v1085_v3  }
 0x10b   :  { %v715_v5 = vpop.f32.mrf.mxu3 }
 0x10c   :  { %v423_v4 = vpop.f32.mrf.mxu2  ;;  %v716_v9 = vadd.f32 %v1420_v21, %v715_v5 }
 0x10d   :  { %v1165_v6 = vpack.c.bf16 %v423_v4, %v421_v61  ;;  %v248_v7 = vpop.f32.mrf.mxu0  ;;  %v337_v8 = vpop.f32.mrf.mxu1 }
 0x10e   :  { %771 = vst [vmem:[#allocation4 + $0x80] sm:$0xff] %v716_v9 }
 0x10f   :  { %1245 = vst [vmem:[#allocation2 + $0x138] sm:$0xff] %v1165_v6  }
 0x113   :  { %v717_v11 = vpop.f32.mrf.mxu3 }
 0x114   :  { %v426_v10 = vpop.f32.mrf.mxu2  ;;  %v718_v14 = vadd.f32 %v1420_v21, %v717_v11 }
 0x115   :  { %v250_v12 = vpop.f32.mrf.mxu0  ;;  %v339_v13 = vpop.f32.mrf.mxu1 }
 0x116   :  { %v1010_v15 = vpack.c.bf16 %v250_v12, %v248_v7  ;;  %v1090_v16 = vpack.c.bf16 %v339_v13, %v337_v8  ;;  %772 = vst [vmem:[#allocation4 + $0x88] sm:$0xff] %v718_v14 }
 0x118   :  { %1214 = vst [vmem:[#allocation2 + $0x40] sm:$0xff] %v1010_v15  }
 0x119   :  { %1230 = vst [vmem:[#allocation2 + $0xc0] sm:$0xff] %v1090_v16  }
 0x11b   :  { %v720_v18 = vpop.f32.mrf.mxu3 }
 0x11c   :  { %v428_v17 = vpop.f32.mrf.mxu2  ;;  %v721_v23 = vadd.f32 %v1420_v21, %v720_v18 }
 0x11d   :  { %v1170_v19 = vpack.c.bf16 %v428_v17, %v426_v10  ;;  %v253_v20 = vpop.f32.mrf.mxu0  ;;  %v342_v22 = vpop.f32.mrf.mxu1 }
 0x11e   :  { %773 = vst [vmem:[#allocation4 + $0x90] sm:$0xff] %v721_v23 }
 0x11f   :  { %1246 = vst [vmem:[#allocation2 + $0x140] sm:$0xff] %v1170_v19  }
 0x123   :  { %v722_v25 = vpop.f32.mrf.mxu3 }
 0x124   :  { %v431_v24 = vpop.f32.mrf.mxu2  ;;  %v723_v28 = vadd.f32 %v1420_v21, %v722_v25 }
 0x125   :  { %v255_v26 = vpop.f32.mrf.mxu0  ;;  %v344_v27 = vpop.f32.mrf.mxu1 }
 0x126   :  { %v1015_v29 = vpack.c.bf16 %v255_v26, %v253_v20  ;;  %v1095_v30 = vpack.c.bf16 %v344_v27, %v342_v22  ;;  %774 = vst [vmem:[#allocation4 + $0x98] sm:$0xff] %v723_v28 }
 0x128   :  { %1215 = vst [vmem:[#allocation2 + $0x48] sm:$0xff] %v1015_v29  }
 0x129   :  { %1231 = vst [vmem:[#allocation2 + $0xc8] sm:$0xff] %v1095_v30  }
 0x12b   :  { %v725_v32 = vpop.f32.mrf.mxu3 }
 0x12c   :  { %v433_v31 = vpop.f32.mrf.mxu2  ;;  %v726_v36 = vadd.f32 %v1420_v21, %v725_v32 }
 0x12d   :  { %v1175_v33 = vpack.c.bf16 %v433_v31, %v431_v24  ;;  %v258_v34 = vpop.f32.mrf.mxu0  ;;  %v347_v35 = vpop.f32.mrf.mxu1 }
 0x12e   :  { %775 = vst [vmem:[#allocation4 + $0xa0] sm:$0xff] %v726_v36 }
 0x12f   :  { %1247 = vst [vmem:[#allocation2 + $0x148] sm:$0xff] %v1175_v33  }
 0x133   :  { %v727_v38 = vpop.f32.mrf.mxu3 }
 0x134   :  { %v436_v37 = vpop.f32.mrf.mxu2  ;;  %v728_v41 = vadd.f32 %v1420_v21, %v727_v38 }
 0x135   :  { %v260_v39 = vpop.f32.mrf.mxu0  ;;  %v349_v40 = vpop.f32.mrf.mxu1 }
 0x136   :  { %v1020_v42 = vpack.c.bf16 %v260_v39, %v258_v34  ;;  %v1100_v43 = vpack.c.bf16 %v349_v40, %v347_v35  ;;  %776 = vst [vmem:[#allocation4 + $0xa8] sm:$0xff] %v728_v41 }
 0x138   :  { %1216 = vst [vmem:[#allocation2 + $0x50] sm:$0xff] %v1020_v42  }
 0x139   :  { %1232 = vst [vmem:[#allocation2 + $0xd0] sm:$0xff] %v1100_v43  }
 0x13b   :  { %v730_v45 = vpop.f32.mrf.mxu3 }
 0x13c   :  { %v438_v44 = vpop.f32.mrf.mxu2  ;;  %v731_v49 = vadd.f32 %v1420_v21, %v730_v45 }
 0x13d   :  { %v1180_v46 = vpack.c.bf16 %v438_v44, %v436_v37  ;;  %v263_v47 = vpop.f32.mrf.mxu0  ;;  %v352_v48 = vpop.f32.mrf.mxu1 }
 0x13e   :  { %777 = vst [vmem:[#allocation4 + $0xb0] sm:$0xff] %v731_v49 }
 0x13f   :  { %1248 = vst [vmem:[#allocation2 + $0x150] sm:$0xff] %v1180_v46  }
 0x143   :  { %v732_v51 = vpop.f32.mrf.mxu3 }
 0x144   :  { %v441_v50 = vpop.f32.mrf.mxu2  ;;  %v733_v54 = vadd.f32 %v1420_v21, %v732_v51 }
 0x145   :  { %v265_v52 = vpop.f32.mrf.mxu0  ;;  %v354_v53 = vpop.f32.mrf.mxu1 }
 0x146   :  { %v1025_v55 = vpack.c.bf16 %v265_v52, %v263_v47  ;;  %v1105_v56 = vpack.c.bf16 %v354_v53, %v352_v48  ;;  %778 = vst [vmem:[#allocation4 + $0xb8] sm:$0xff] %v733_v54 }
 0x148   :  { %1217 = vst [vmem:[#allocation2 + $0x58] sm:$0xff] %v1025_v55  }
 0x149   :  { %1233 = vst [vmem:[#allocation2 + $0xd8] sm:$0xff] %v1105_v56  }
 0x14b   :  { %v735_v58 = vpop.f32.mrf.mxu3 }
 0x14c   :  { %v443_v57 = vpop.f32.mrf.mxu2  ;;  %v736_v62 = vadd.f32 %v1420_v21, %v735_v58 }
 0x14d   :  { %v1185_v59 = vpack.c.bf16 %v443_v57, %v441_v50  ;;  %v268_v60 = vpop.f32.mrf.mxu0  ;;  %v357_v61 = vpop.f32.mrf.mxu1 }
 0x14e   :  { %779 = vst [vmem:[#allocation4 + $0xc0] sm:$0xff] %v736_v62 }
 0x14f   :  { %1249 = vst [vmem:[#allocation2 + $0x158] sm:$0xff] %v1185_v59  }
 0x153   :  { %v737_v0 = vpop.f32.mrf.mxu3 }
 0x154   :  { %v446_v63 = vpop.f32.mrf.mxu2  ;;  %v738_v3 = vadd.f32 %v1420_v21, %v737_v0 }
 0x155   :  { %v270_v1 = vpop.f32.mrf.mxu0  ;;  %v359_v2 = vpop.f32.mrf.mxu1 }
 0x156   :  { %v1030_v4 = vpack.c.bf16 %v270_v1, %v268_v60  ;;  %v1110_v5 = vpack.c.bf16 %v359_v2, %v357_v61  ;;  %780 = vst [vmem:[#allocation4 + $0xc8] sm:$0xff] %v738_v3 }
 0x158   :  { %1218 = vst [vmem:[#allocation2 + $0x60] sm:$0xff] %v1030_v4  }
 0x159   :  { %1234 = vst [vmem:[#allocation2 + $0xe0] sm:$0xff] %v1110_v5  }
 0x15b   :  { %v740_v7 = vpop.f32.mrf.mxu3 }
 0x15c   :  { %v448_v6 = vpop.f32.mrf.mxu2  ;;  %v741_v11 = vadd.f32 %v1420_v21, %v740_v7 }
 0x15d   :  { %v1190_v8 = vpack.c.bf16 %v448_v6, %v446_v63  ;;  %v273_v9 = vpop.f32.mrf.mxu0  ;;  %v362_v10 = vpop.f32.mrf.mxu1 }
 0x15e   :  { %781 = vst [vmem:[#allocation4 + $0xd0] sm:$0xff] %v741_v11 }
 0x15f   :  { %1250 = vst [vmem:[#allocation2 + $0x160] sm:$0xff] %v1190_v8  }
 0x163   :  { %v742_v13 = vpop.f32.mrf.mxu3 }
 0x164   :  { %v451_v12 = vpop.f32.mrf.mxu2  ;;  %v743_v16 = vadd.f32 %v1420_v21, %v742_v13 }
 0x165   :  { %v275_v14 = vpop.f32.mrf.mxu0  ;;  %v364_v15 = vpop.f32.mrf.mxu1 }
 0x166   :  { %v1035_v17 = vpack.c.bf16 %v275_v14, %v273_v9  ;;  %v1115_v18 = vpack.c.bf16 %v364_v15, %v362_v10  ;;  %782 = vst [vmem:[#allocation4 + $0xd8] sm:$0xff] %v743_v16 }
 0x168   :  { %1219 = vst [vmem:[#allocation2 + $0x68] sm:$0xff] %v1035_v17  }
 0x169   :  { %1235 = vst [vmem:[#allocation2 + $0xe8] sm:$0xff] %v1115_v18  }
 0x16b   :  { %v745_v20 = vpop.f32.mrf.mxu3 }
 0x16c   :  { %v453_v19 = vpop.f32.mrf.mxu2  ;;  %v746_v25 = vadd.f32 %v1420_v21, %v745_v20 }
 0x16d   :  { %v1195_v22 = vpack.c.bf16 %v453_v19, %v451_v12  ;;  %v278_v23 = vpop.f32.mrf.mxu0  ;;  %v367_v24 = vpop.f32.mrf.mxu1 }
 0x16e   :  { %783 = vst [vmem:[#allocation4 + $0xe0] sm:$0xff] %v746_v25 }
 0x16f   :  { %1251 = vst [vmem:[#allocation2 + $0x168] sm:$0xff] %v1195_v22  }
 0x173   :  { %v747_v27 = vpop.f32.mrf.mxu3 }
 0x174   :  { %v456_v26 = vpop.f32.mrf.mxu2  ;;  %v748_v30 = vadd.f32 %v1420_v21, %v747_v27 }
 0x175   :  { %v280_v28 = vpop.f32.mrf.mxu0  ;;  %v369_v29 = vpop.f32.mrf.mxu1 }
 0x176   :  { %v1040_v31 = vpack.c.bf16 %v280_v28, %v278_v23  ;;  %v1120_v32 = vpack.c.bf16 %v369_v29, %v367_v24  ;;  %784 = vst [vmem:[#allocation4 + $0xe8] sm:$0xff] %v748_v30 }
 0x178   :  { %1220 = vst [vmem:[#allocation2 + $0x70] sm:$0xff] %v1040_v31  }
 0x179   :  { %1236 = vst [vmem:[#allocation2 + $0xf0] sm:$0xff] %v1120_v32  }
 0x17b   :  { %v750_v34 = vpop.f32.mrf.mxu3 }
 0x17c   :  { %v458_v33 = vpop.f32.mrf.mxu2  ;;  %v751_v38 = vadd.f32 %v1420_v21, %v750_v34 }
 0x17d   :  { %v1200_v35 = vpack.c.bf16 %v458_v33, %v456_v26  ;;  %v283_v36 = vpop.f32.mrf.mxu0  ;;  %v372_v37 = vpop.f32.mrf.mxu1 }
 0x17e   :  { %785 = vst [vmem:[#allocation4 + $0xf0] sm:$0xff] %v751_v38 }
 0x17f   :  { %1252 = vst [vmem:[#allocation2 + $0x170] sm:$0xff] %v1200_v35  }
 0x183   :  { %v752_v40 = vpop.f32.mrf.mxu3 }
 0x184   :  { %v461_v39 = vpop.f32.mrf.mxu2  ;;  %v753_v43 = vadd.f32 %v1420_v21, %v752_v40 }
 0x185   :  { %v285_v41 = vpop.f32.mrf.mxu0  ;;  %v374_v42 = vpop.f32.mrf.mxu1 }
 0x186   :  { %v1045_v44 = vpack.c.bf16 %v285_v41, %v283_v36  ;;  %v1125_v45 = vpack.c.bf16 %v374_v42, %v372_v37  ;;  %786 = vst [vmem:[#allocation4 + $0xf8] sm:$0xff] %v753_v43 }
 0x187   :  { %812 = dma.vmem_to_hbm [thread:$0]  %s805_s26, 4096, %s807_s29, [#allocation5], %s1316_s30, %s1316_s30, %s1317_s6  }
 0x188   :  { %1221 = vst [vmem:[#allocation2 + $0x78] sm:$0xff] %v1045_v44  }
 0x189   :  { %1237 = vst [vmem:[#allocation2 + $0xf8] sm:$0xff] %v1125_v45  }
 0x18c   :  { %v463_v46 = vpop.f32.mrf.mxu2 }
 0x18d   :  { %v1205_v47 = vpack.c.bf16 %v463_v46, %v461_v39 }
 0x18f   :  { %1253 = vst [vmem:[#allocation2 + $0x178] sm:$0xff] %v1205_v47  }
 0x190   :  { %799 = dma.vmem_to_hbm [thread:$0]  %s792_s8, 6144, %s794_s10, [#allocation3], %s1319_s11, %s1319_s11, %s1320_s12  }
 0x191   :  { %1310 = dma.done.wait [#allocation3], 6144  }
 0x192   :  { %1311 = vsyncadd [#allocation3], 4294961152 }
 0x193   :  { %1312 = dma.done.wait [#allocation5], 4096  }
 0x194   :  { %1313 = vsyncadd [#allocation5], 4294963200 }
 0x195   :  { %821 = vsyncpa [#allocation3], 1 }
 0x196   :  { %822 = vsyncpa [#allocation5], 1 }

</bundles_post_ra>
